<compile_context>
chip_gen: v7x
topology: tpu7x:2x2x1
jax: 0.10.0
libtpu: 0.0.40
codegen_flags: <defaults>
</compile_context>

<pallas_src>
import functools

import jax
import jax.numpy as jnp
import numpy as np
from jax import lax
from jax.experimental import pallas as pl
from jax.experimental.pallas import tpu as pltpu

_EPS = 1e-5


def _round_up(x, m):
    return (x + m - 1) // m * m


def _vmem_capacity_bytes():
    try:
        return int(pltpu.get_tpu_info().vmem_capacity_bytes)
    except Exception:
        return 64 * 1024 * 1024  # v7x per-TensorCore VMEM: most conservative


def _auto_tile_lanes(l_total, min_tile, cmax, itemsize):
    """Pick a lane-tile so the fattest pass (bn1+conv2) fits comfortably in VMEM."""
    budget = _vmem_capacity_bytes() // 4
    per_lane = (3 * cmax * itemsize) * 2      # prev/cur/next blocks, double-buffered
    per_lane += cmax * 4 + cmax * itemsize    # f32 BN window + compute-dtype window
    per_lane += 3 * cmax * itemsize           # live row-group im2col
    per_lane += cmax * 4                      # f32 accumulator
    per_lane += 2 * cmax * itemsize           # output block, double-buffered
    tile = min(budget // max(per_lane, 1), 32768, _round_up(l_total, 128))
    tile = (tile // 128) * 128
    return max(tile, min_tile)


def _conv3x3_rowgroups(window, w, *, base, wp, tile):
    """3x3 conv over a lane window.

    window: (C, Tw) activation (compute dtype), already zero wherever the
            convolution's zero-padding / invalid lanes require it.
    w     : (3, Co, 3*C) im2col weights; row-group kh, columns kw-major /
            channel-minor.
    base  : lane offset of tap (kh=0, kw=0) relative to the output lane
            (>= 0 by construction; taps never wrap because Tw >= tile + max shift).
    Returns (Co, tile) in f32.  Three K=3*C matmuls accumulated in registers
    keep the live im2col at 3*C x tile (vs 9*C x tile).
    """
    tw = window.shape[-1]
    acc = None
    for kh in range(3):
        taps = []
        for kw in range(3):
            s = base + kh * wp + kw                     # static lane shift
            t = window if s == 0 else pltpu.roll(window, shift=(-s) % tw, axis=1)
            taps.append(t[:, :tile])                    # 128-aligned slice
        rg = jnp.concatenate(taps, axis=0)              # (3*C, tile)
        part = jnp.dot(w[kh], rg, preferred_element_type=jnp.float32)
        acc = part if acc is None else acc + part
    return acc


def _conv1_stats_kernel(x_cur_ref, x_nxt_ref, mask_ref, w1_ref,
                        y1_ref, s1_ref, s2_ref, *, wp, halo1, tile):
    x_cur = x_cur_ref[...]
    x_nxt = x_nxt_ref[...]
    win = jnp.concatenate([x_cur, x_nxt[:, :halo1]], axis=1)      # (Cin, T+halo1)
    y = _conv3x3_rowgroups(win, w1_ref[...], base=0, wp=wp, tile=tile)  # f32
    y1_ref[...] = y.astype(y1_ref.dtype)
    # partial BN1 stats over the valid lanes of this tile (XLU reductions; the
    # MXU is underfilled at these channel counts so this is not the binder).
    m = mask_ref[...]                                             # (1, T) f32
    ym = y * m
    s1_ref[...] = jnp.sum(ym, axis=1, keepdims=True)[None]
    s2_ref[...] = jnp.sum(ym * y, axis=1, keepdims=True)[None]


def _bn1_conv2_stats_kernel(y1p_ref, y1c_ref, y1n_ref,
                            mp_ref, mc_ref, mn_ref,
                            sc1_ref, sh1_ref, w2_ref,
                            y2_ref, s1_ref, s2_ref, *,
                            wp, halo, tile, compute_dtype):
    y1p = y1p_ref[...]
    y1c = y1c_ref[...]
    y1n = y1n_ref[...]
    raw = jnp.concatenate([y1p[:, tile - halo:], y1c, y1n[:, :halo]],
                          axis=1).astype(jnp.float32)             # (Cmid, Tw)
    m = jnp.concatenate([mp_ref[...][:, tile - halo:], mc_ref[...],
                         mn_ref[...][:, :halo]], axis=1)          # (1, Tw) f32
    # BN1 affine + ReLU in f32.  Select (not multiply) with the mask: the halo
    # blocks of y1_raw outside the written range hold uninitialized data, and
    # every non-valid lane (padding rows/cols, tails) must be exactly zero so
    # conv2 sees proper zero padding.
    a = raw * sc1_ref[...] + sh1_ref[...]
    win = jnp.where(m > 0.0, jnp.maximum(a, 0.0), 0.0).astype(compute_dtype)
    y = _conv3x3_rowgroups(win, w2_ref[...], base=halo - (wp + 1), wp=wp, tile=tile)
    y2_ref[...] = y.astype(y2_ref.dtype)
    mc = m[:, halo:halo + tile]                                   # mask of this tile
    ym = y * mc
    s1_ref[...] = jnp.sum(ym, axis=1, keepdims=True)[None]
    s2_ref[...] = jnp.sum(ym * y, axis=1, keepdims=True)[None]


def _bn2_relu_kernel(y2_ref, sc2_ref, sh2_ref, out_ref):
    y = y2_ref[...].astype(jnp.float32) * sc2_ref[...] + sh2_ref[...]
    out_ref[...] = jnp.maximum(y, 0.0).astype(out_ref.dtype)


def double_conv(x_nchw, w1, g1, b1, w2, g2, b2, *,
                compute_dtype=jnp.bfloat16, tile_lanes=None):
    """Pallas DoubleConv forward.  x_nchw: (N,Cin,H,W); w*: PyTorch OIHW weights."""
    N, Cin, H, W = x_nchw.shape
    Cmid, Cout = w1.shape[0], w2.shape[0]
    Hp, Wp = H + 2, W + 2
    L = N * Hp * Wp
    f32 = jnp.float32

    itemsize = jnp.dtype(compute_dtype).itemsize
    c_align = 16 if itemsize < 4 else 8
    Cin_p = _round_up(Cin, c_align)
    Cmid_p = _round_up(Cmid, c_align)
    Cout_p = _round_up(Cout, c_align)

    halo = _round_up(Wp + 1, 128)        # conv2 needs +/-(Wp+1) lanes of halo
    halo1 = _round_up(2 * Wp + 2, 128)   # conv1 needs +(2*Wp+2) lanes of halo
    min_tile = max(halo, halo1)
    if tile_lanes is None:
        T = _auto_tile_lanes(L, min_tile, max(Cin_p, Cmid_p, Cout_p), itemsize)
    else:
        T = max(_round_up(tile_lanes, 128), min_tile)
    G = -(-L // T)
    Lp = G * T

    # ---- one-time layout plumbing (NCHW -> channels-major flat lanes).
    xp = jnp.pad(x_nchw.astype(f32), ((0, 0), (0, 0), (1, 1), (1, 1)))
    x_flat = jnp.transpose(xp, (1, 0, 2, 3)).reshape(Cin, L)
    # one leading + one trailing zero tile so halo index maps never go out of range
    x_flat = jnp.pad(x_flat, ((0, Cin_p - Cin), (T, Lp - L + T))).astype(compute_dtype)

    # valid-output mask, same padded-flat convention (zero on pad tiles / tails)
    mask = jnp.pad(jnp.ones((N, H, W), f32), ((0, 0), (0, 2), (0, 2)))
    mask = jnp.pad(mask.reshape(1, L), ((0, 0), (T, Lp - L + T)))

    def prep_w(w, co, cop, ci, cip):
        wt = jnp.transpose(w.astype(f32), (0, 2, 3, 1))          # (O, kh, kw, I)
        wt = jnp.pad(wt, ((0, cop - co), (0, 0), (0, 0), (0, cip - ci)))
        return jnp.transpose(wt, (1, 0, 2, 3)).reshape(3, cop, 3 * cip).astype(compute_dtype)

    w1k = prep_w(w1, Cmid, Cmid_p, Cin, Cin_p)
    w2k = prep_w(w2, Cout, Cout_p, Cmid, Cmid_p)

    n_valid = float(N * H * W)

    cparams = pltpu.CompilerParams(
        dimension_semantics=("parallel",),               # megacore-shardable tiles
        vmem_limit_bytes=int(_vmem_capacity_bytes() * 3 // 4))

    # ---- pass 1: conv1 + per-tile partial BN1 stats -------------------------
    # (input/output specs use the default double-buffered pipeline; bump to
    #  pl.Buffered(3) on the activation input if DMA is exposed on v5e)
    y1_raw, s1a, s2a = pl.pallas_call(
        functools.partial(_conv1_stats_kernel, wp=Wp, halo1=halo1, tile=T),
        grid=(G,),
        in_specs=[
            pl.BlockSpec((Cin_p, T), lambda g: (0, g + 1)),       # current tile
            pl.BlockSpec((Cin_p, T), lambda g: (0, g + 2)),       # forward-halo tile
            pl.BlockSpec((1, T), lambda g: (0, g + 1)),           # valid mask
            pl.BlockSpec((3, Cmid_p, 3 * Cin_p), lambda g: (0, 0, 0)),
        ],
        out_specs=(
            pl.BlockSpec((Cmid_p, T), lambda g: (0, g + 1)),      # raw conv1 (padded layout)
            pl.BlockSpec((1, Cmid_p, 1), lambda g: (g, 0, 0)),
            pl.BlockSpec((1, Cmid_p, 1), lambda g: (g, 0, 0)),
        ),
        out_shape=(
            jax.ShapeDtypeStruct((Cmid_p, Lp + 2 * T), compute_dtype),
            jax.ShapeDtypeStruct((G, Cmid_p, 1), f32),
            jax.ShapeDtypeStruct((G, Cmid_p, 1), f32),
        ),
        compiler_params=cparams,
    )(x_flat, x_flat, mask, w1k)

    def finalize(s1_t, s2_t, gamma, beta, cp):
        # tiny (C,) reduction + scale/shift fold, f32, plain JAX between passes
        s1 = jnp.sum(s1_t[:, :, 0], axis=0)
        s2 = jnp.sum(s2_t[:, :, 0], axis=0)
        mean = s1 / n_valid
        var = jnp.maximum(s2 / n_valid - mean * mean, 0.0)
        gp = jnp.pad(gamma.astype(f32), (0, cp - gamma.shape[0]))
        bp = jnp.pad(beta.astype(f32), (0, cp - beta.shape[0]))
        scale = gp * lax.rsqrt(var + _EPS)
        shift = bp - mean * scale
        return scale.reshape(cp, 1), shift.reshape(cp, 1)

    scale1, shift1 = finalize(s1a, s2a, g1, b1, Cmid_p)

    # ---- pass 2: BN1+ReLU, conv2, per-tile partial BN2 stats ----------------
    y2_raw, s1b, s2b = pl.pallas_call(
        functools.partial(_bn1_conv2_stats_kernel, wp=Wp, halo=halo, tile=T,
                          compute_dtype=compute_dtype),
        grid=(G,),
        in_specs=[
            pl.BlockSpec((Cmid_p, T), lambda g: (0, g)),          # prev (backward halo)
            pl.BlockSpec((Cmid_p, T), lambda g: (0, g + 1)),      # current
            pl.BlockSpec((Cmid_p, T), lambda g: (0, g + 2)),      # next (forward halo)
            pl.BlockSpec((1, T), lambda g: (0, g)),
            pl.BlockSpec((1, T), lambda g: (0, g + 1)),
            pl.BlockSpec((1, T), lambda g: (0, g + 2)),
            pl.BlockSpec((Cmid_p, 1), lambda g: (0, 0)),          # BN1 scale (f32)
            pl.BlockSpec((Cmid_p, 1), lambda g: (0, 0)),          # BN1 shift (f32)
            pl.BlockSpec((3, Cout_p, 3 * Cmid_p), lambda g: (0, 0, 0)),
        ],
        out_specs=(
            pl.BlockSpec((Cout_p, T), lambda g: (0, g)),
            pl.BlockSpec((1, Cout_p, 1), lambda g: (g, 0, 0)),
            pl.BlockSpec((1, Cout_p, 1), lambda g: (g, 0, 0)),
        ),
        out_shape=(
            jax.ShapeDtypeStruct((Cout_p, Lp), compute_dtype),
            jax.ShapeDtypeStruct((G, Cout_p, 1), f32),
            jax.ShapeDtypeStruct((G, Cout_p, 1), f32),
        ),
        compiler_params=cparams,
    )(y1_raw, y1_raw, y1_raw, mask, mask, mask, scale1, shift1, w2k)

    scale2, shift2 = finalize(s1b, s2b, g2, b2, Cout_p)

    # ---- pass 3: BN2 + ReLU (pointwise) --------------------------------------
    out_flat = pl.pallas_call(
        _bn2_relu_kernel,
        grid=(G,),
        in_specs=[
            pl.BlockSpec((Cout_p, T), lambda g: (0, g)),
            pl.BlockSpec((Cout_p, 1), lambda g: (0, 0)),
            pl.BlockSpec((Cout_p, 1), lambda g: (0, 0)),
        ],
        out_specs=pl.BlockSpec((Cout_p, T), lambda g: (0, g)),
        out_shape=jax.ShapeDtypeStruct((Cout_p, Lp), f32),
        compiler_params=cparams,
    )(y2_raw, scale2, shift2)

    out = out_flat[:Cout, :L].reshape(Cout, N, Hp, Wp)[:, :, :H, :W]
    return jnp.transpose(out, (1, 0, 2, 3))


def double_conv_ref(x, w1, g1, b1, w2, g2, b2):
    """Pure-JAX reference (NCHW, training-mode BN, biased variance)."""
    def conv(x, w):
        return lax.conv_general_dilated(
            x, w, window_strides=(1, 1), padding=((1, 1), (1, 1)),
            dimension_numbers=("NCHW", "OIHW", "NCHW"))

    def bn_relu(y, g, b):
        mean = jnp.mean(y, axis=(0, 2, 3), keepdims=True)
        var = jnp.mean((y - mean) ** 2, axis=(0, 2, 3), keepdims=True)
        yn = (y - mean) * lax.rsqrt(var + _EPS)
        yn = yn * g.reshape(1, -1, 1, 1) + b.reshape(1, -1, 1, 1)
        return jnp.maximum(yn, 0.0)

    y = bn_relu(conv(x, w1), g1, b1)
    return bn_relu(conv(y, w2), g2, b2)


if __name__ == "__main__":
    def run_case(n, cin, cmid, cout, h, w, compute_dtype, tile, atol, rtol, key):
        kx, k1, k2, kg1, kb1, kg2, kb2 = jax.random.split(key, 7)
        x = jax.random.normal(kx, (n, cin, h, w), jnp.float32)
        w1 = jax.random.normal(k1, (cmid, cin, 3, 3), jnp.float32) * 0.2  # bias=False
        w2 = jax.random.normal(k2, (cout, cmid, 3, 3), jnp.float32) * 0.2
        g1 = 1.0 + 0.1 * jax.random.normal(kg1, (cmid,), jnp.float32)     # BN gamma/beta
        b1 = 0.1 * jax.random.normal(kb1, (cmid,), jnp.float32)
        g2 = 1.0 + 0.1 * jax.random.normal(kg2, (cout,), jnp.float32)
        b2 = 0.1 * jax.random.normal(kb2, (cout,), jnp.float32)

        out = jax.block_until_ready(
            double_conv(x, w1, g1, b1, w2, g2, b2,
                        compute_dtype=compute_dtype, tile_lanes=tile))
        ref = jax.block_until_ready(double_conv_ref(x, w1, g1, b1, w2, g2, b2))
        assert out.shape == (n, cout, h, w), out.shape
        np.testing.assert_allclose(np.asarray(out), np.asarray(ref),
                                   atol=atol, rtol=rtol)

    key = jax.random.PRNGKey(0)
    ka, kb = jax.random.split(key)
    # f32 compute path, auto tile sizing (single tile), tight tolerance
    run_case(2, 4, 8, 8, 16, 16, jnp.float32, None, 2e-4, 2e-4, ka)
    # bf16 matmul path, forced small tile -> multi-tile grid with halos,
    # ragged channel counts exercising the channel-padding paths
    run_case(2, 3, 6, 10, 20, 20, jnp.bfloat16, 256, 1e-1, 1e-1, kb)
    print("KERNEL_OK")
</pallas_src>

<mosaic_0001>
module attributes {stable_mosaic.version = 11 : i64} {
  func.func @_conv1_stats_kernel(%arg0: i32, %arg1: memref<8x768xf32, #tpu.memory_space<vmem>>, %arg2: memref<8x768xf32, #tpu.memory_space<vmem>>, %arg3: memref<1x768xf32, #tpu.memory_space<vmem>>, %arg4: memref<3x8x24xf32, #tpu.memory_space<vmem>>, %arg5: memref<8x768xf32, #tpu.memory_space<vmem>>, %arg6: memref<1x8x1xf32, #tpu.memory_space<vmem>>, %arg7: memref<1x8x1xf32, #tpu.memory_space<vmem>>) attributes {dimension_semantics = [#tpu.dimension_semantics<parallel>], iteration_bounds = array<i64: 1>, scalar_prefetch = 0 : i64, scratch_operands = 0 : i64, tpu.core_type = #tpu.core_type<tc>, window_params = [{transform_indices = @transform_0, window_bounds = array<i64: 8, 768>}, {transform_indices = @transform_1, window_bounds = array<i64: 8, 768>}, {transform_indices = @transform_2, window_bounds = array<i64: 1, 768>}, {pipeline_mode = #tpu.pipeline_mode<synchronous>, transform_indices = @transform_3, window_bounds = array<i64: 3, 8, 24>}, {transform_indices = @transform_4, window_bounds = array<i64: 8, 768>}, {transform_indices = @transform_5, window_bounds = array<i64: 1, 8, 1>}, {transform_indices = @transform_6, window_bounds = array<i64: 1, 8, 1>}]} {
    %c0 = arith.constant 0 : index
    %c0_0 = arith.constant 0 : index
    %0 = vector.load %arg1[%c0, %c0_0] : memref<8x768xf32, #tpu.memory_space<vmem>>, vector<8x768xf32>
    %c0_1 = arith.constant 0 : index
    %c0_2 = arith.constant 0 : index
    %1 = vector.load %arg2[%c0_1, %c0_2] : memref<8x768xf32, #tpu.memory_space<vmem>>, vector<8x768xf32>
    %2 = vector.extract_strided_slice %1 {offsets = [0, 0], sizes = [8, 128], strides = [1, 1]} : vector<8x768xf32> to vector<8x128xf32>
    %3 = tpu.concatenate %0, %2 in 1 : vector<8x768xf32>, vector<8x128xf32> -> vector<8x896xf32>
    %c0_3 = arith.constant 0 : index
    %c0_4 = arith.constant 0 : index
    %c0_5 = arith.constant 0 : index
    %4 = vector.load %arg4[%c0_3, %c0_4, %c0_5] : memref<3x8x24xf32, #tpu.memory_space<vmem>>, vector<3x8x24xf32>
    %5 = vector.extract_strided_slice %3 {offsets = [0, 0], sizes = [8, 768], strides = [1, 1]} : vector<8x896xf32> to vector<8x768xf32>
    %c895_i32 = arith.constant 895 : i32
    %6 = tpu.dynamic_rotate %3 by %c895_i32 dim 1 : vector<8x896xf32>, i32 -> vector<8x896xf32>
    %7 = vector.extract_strided_slice %6 {offsets = [0, 0], sizes = [8, 768], strides = [1, 1]} : vector<8x896xf32> to vector<8x768xf32>
    %c894_i32 = arith.constant 894 : i32
    %8 = tpu.dynamic_rotate %3 by %c894_i32 dim 1 : vector<8x896xf32>, i32 -> vector<8x896xf32>
    %9 = vector.extract_strided_slice %8 {offsets = [0, 0], sizes = [8, 768], strides = [1, 1]} : vector<8x896xf32> to vector<8x768xf32>
    %10 = tpu.concatenate %5, %7, %9 in 0 : vector<8x768xf32>, vector<8x768xf32>, vector<8x768xf32> -> vector<24x768xf32>
    %11 = vector.extract_strided_slice %4 {offsets = [0, 0, 0], sizes = [1, 8, 24], strides = [1, 1, 1]} : vector<3x8x24xf32> to vector<1x8x24xf32>
    %12 = vector.shape_cast %11 : vector<1x8x24xf32> to vector<8x24xf32>
    %cst = arith.constant dense<0.000000e+00> : vector<8x768xf32>
    %13 = tpu.matmul %12, %10, %cst {dimension_numbers = #tpu.dot_dimension_numbers<[1], [0], [0], [1], [0, 0, 1, 1], [], []>} : vector<8x24xf32>, vector<24x768xf32>, vector<8x768xf32> -> vector<8x768xf32>
    %c878_i32 = arith.constant 878 : i32
    %14 = tpu.dynamic_rotate %3 by %c878_i32 dim 1 : vector<8x896xf32>, i32 -> vector<8x896xf32>
    %15 = vector.extract_strided_slice %14 {offsets = [0, 0], sizes = [8, 768], strides = [1, 1]} : vector<8x896xf32> to vector<8x768xf32>
    %c877_i32 = arith.constant 877 : i32
    %16 = tpu.dynamic_rotate %3 by %c877_i32 dim 1 : vector<8x896xf32>, i32 -> vector<8x896xf32>
    %17 = vector.extract_strided_slice %16 {offsets = [0, 0], sizes = [8, 768], strides = [1, 1]} : vector<8x896xf32> to vector<8x768xf32>
    %c876_i32 = arith.constant 876 : i32
    %18 = tpu.dynamic_rotate %3 by %c876_i32 dim 1 : vector<8x896xf32>, i32 -> vector<8x896xf32>
    %19 = vector.extract_strided_slice %18 {offsets = [0, 0], sizes = [8, 768], strides = [1, 1]} : vector<8x896xf32> to vector<8x768xf32>
    %20 = tpu.concatenate %15, %17, %19 in 0 : vector<8x768xf32>, vector<8x768xf32>, vector<8x768xf32> -> vector<24x768xf32>
    %21 = vector.extract_strided_slice %4 {offsets = [1, 0, 0], sizes = [1, 8, 24], strides = [1, 1, 1]} : vector<3x8x24xf32> to vector<1x8x24xf32>
    %22 = vector.shape_cast %21 : vector<1x8x24xf32> to vector<8x24xf32>
    %cst_6 = arith.constant dense<0.000000e+00> : vector<8x768xf32>
    %23 = tpu.matmul %22, %20, %cst_6 {dimension_numbers = #tpu.dot_dimension_numbers<[1], [0], [0], [1], [0, 0, 1, 1], [], []>} : vector<8x24xf32>, vector<24x768xf32>, vector<8x768xf32> -> vector<8x768xf32>
    %24 = arith.addf %13, %23 : vector<8x768xf32>
    %c860_i32 = arith.constant 860 : i32
    %25 = tpu.dynamic_rotate %3 by %c860_i32 dim 1 : vector<8x896xf32>, i32 -> vector<8x896xf32>
    %26 = vector.extract_strided_slice %25 {offsets = [0, 0], sizes = [8, 768], strides = [1, 1]} : vector<8x896xf32> to vector<8x768xf32>
    %c859_i32 = arith.constant 859 : i32
    %27 = tpu.dynamic_rotate %3 by %c859_i32 dim 1 : vector<8x896xf32>, i32 -> vector<8x896xf32>
    %28 = vector.extract_strided_slice %27 {offsets = [0, 0], sizes = [8, 768], strides = [1, 1]} : vector<8x896xf32> to vector<8x768xf32>
    %c858_i32 = arith.constant 858 : i32
    %29 = tpu.dynamic_rotate %3 by %c858_i32 dim 1 : vector<8x896xf32>, i32 -> vector<8x896xf32>
    %30 = vector.extract_strided_slice %29 {offsets = [0, 0], sizes = [8, 768], strides = [1, 1]} : vector<8x896xf32> to vector<8x768xf32>
    %31 = tpu.concatenate %26, %28, %30 in 0 : vector<8x768xf32>, vector<8x768xf32>, vector<8x768xf32> -> vector<24x768xf32>
    %32 = vector.extract_strided_slice %4 {offsets = [2, 0, 0], sizes = [1, 8, 24], strides = [1, 1, 1]} : vector<3x8x24xf32> to vector<1x8x24xf32>
    %33 = vector.shape_cast %32 : vector<1x8x24xf32> to vector<8x24xf32>
    %cst_7 = arith.constant dense<0.000000e+00> : vector<8x768xf32>
    %34 = tpu.matmul %33, %31, %cst_7 {dimension_numbers = #tpu.dot_dimension_numbers<[1], [0], [0], [1], [0, 0, 1, 1], [], []>} : vector<8x24xf32>, vector<24x768xf32>, vector<8x768xf32> -> vector<8x768xf32>
    %35 = arith.addf %24, %34 : vector<8x768xf32>
    %c0_8 = arith.constant 0 : index
    %c0_9 = arith.constant 0 : index
    %36 = vector.load %arg5[%c0_8, %c0_9] : memref<8x768xf32, #tpu.memory_space<vmem>>, vector<8x768xf32>
    tpu.vector_store %arg5[%c0_8, %c0_9], %35 {strides = array<i32>} : memref<8x768xf32, #tpu.memory_space<vmem>>, vector<8x768xf32>,
    %c0_10 = arith.constant 0 : index
    %c0_11 = arith.constant 0 : index
    %37 = vector.load %arg3[%c0_10, %c0_11] : memref<1x768xf32, #tpu.memory_space<vmem>>, vector<1x768xf32>
    %38 = vector.broadcast %37 : vector<1x768xf32> to vector<8x768xf32>
    %39 = arith.mulf %35, %38 : vector<8x768xf32>
    %cst_12 = arith.constant dense<0.000000e+00> : vector<8xf32>
    %40 = vector.multi_reduction <add>, %39, %cst_12 [1] : vector<8x768xf32> to vector<8xf32>
    %41 = vector.shape_cast %40 : vector<8xf32> to vector<8x1xf32>
    %42 = vector.shape_cast %41 : vector<8x1xf32> to vector<1x8x1xf32>
    %c0_13 = arith.constant 0 : index
    %c0_14 = arith.constant 0 : index
    %c0_15 = arith.constant 0 : index
    %43 = vector.load %arg6[%c0_13, %c0_14, %c0_15] : memref<1x8x1xf32, #tpu.memory_space<vmem>>, vector<1x8x1xf32>
    tpu.vector_store %arg6[%c0_13, %c0_14, %c0_15], %42 {strides = array<i32>} : memref<1x8x1xf32, #tpu.memory_space<vmem>>, vector<1x8x1xf32>,
    %44 = arith.mulf %39, %35 : vector<8x768xf32>
    %cst_16 = arith.constant dense<0.000000e+00> : vector<8xf32>
    %45 = vector.multi_reduction <add>, %44, %cst_16 [1] : vector<8x768xf32> to vector<8xf32>
    %46 = vector.shape_cast %45 : vector<8xf32> to vector<8x1xf32>
    %47 = vector.shape_cast %46 : vector<8x1xf32> to vector<1x8x1xf32>
    %c0_17 = arith.constant 0 : index
    %c0_18 = arith.constant 0 : index
    %c0_19 = arith.constant 0 : index
    %48 = vector.load %arg7[%c0_17, %c0_18, %c0_19] : memref<1x8x1xf32, #tpu.memory_space<vmem>>, vector<1x8x1xf32>
    tpu.vector_store %arg7[%c0_17, %c0_18, %c0_19], %47 {strides = array<i32>} : memref<1x8x1xf32, #tpu.memory_space<vmem>>, vector<1x8x1xf32>,
    return
  }
  func.func @transform_0(%arg0: i32) -> (i32, i32) {
    %c1_i32 = arith.constant 1 : i32
    %0 = arith.addi %arg0, %c1_i32 : i32
    %c0_i32 = arith.constant 0 : i32
    %c0_i32_0 = arith.constant 0 : i32
    return %c0_i32, %0 : i32, i32
  }
  func.func @transform_1(%arg0: i32) -> (i32, i32) {
    %c2_i32 = arith.constant 2 : i32
    %0 = arith.addi %arg0, %c2_i32 : i32
    %c0_i32 = arith.constant 0 : i32
    %c0_i32_0 = arith.constant 0 : i32
    return %c0_i32, %0 : i32, i32
  }
  func.func @transform_2(%arg0: i32) -> (i32, i32) {
    %c1_i32 = arith.constant 1 : i32
    %0 = arith.addi %arg0, %c1_i32 : i32
    %c0_i32 = arith.constant 0 : i32
    %c0_i32_0 = arith.constant 0 : i32
    return %c0_i32, %0 : i32, i32
  }
  func.func @transform_3(%arg0: i32) -> (i32, i32, i32) {
    %c0_i32 = arith.constant 0 : i32
    %c0_i32_0 = arith.constant 0 : i32
    %c0_i32_1 = arith.constant 0 : i32
    %c0_i32_2 = arith.constant 0 : i32
    return %c0_i32, %c0_i32_0, %c0_i32_1 : i32, i32, i32
  }
  func.func @transform_4(%arg0: i32) -> (i32, i32) {
    %c1_i32 = arith.constant 1 : i32
    %0 = arith.addi %arg0, %c1_i32 : i32
    %c0_i32 = arith.constant 0 : i32
    %c0_i32_0 = arith.constant 0 : i32
    return %c0_i32, %0 : i32, i32
  }
  func.func @transform_5(%arg0: i32) -> (i32, i32, i32) {
    %c0_i32 = arith.constant 0 : i32
    %c0_i32_0 = arith.constant 0 : i32
    %c0_i32_1 = arith.constant 0 : i32
    return %arg0, %c0_i32, %c0_i32_0 : i32, i32, i32
  }
  func.func @transform_6(%arg0: i32) -> (i32, i32, i32) {
    %c0_i32 = arith.constant 0 : i32
    %c0_i32_0 = arith.constant 0 : i32
    %c0_i32_1 = arith.constant 0 : i32
    return %arg0, %c0_i32, %c0_i32_0 : i32, i32, i32
  }
}

</mosaic_0001>

<bundles_post_ra>
// kernel: tpu_custom_call.1
= control target key start
LH: loop header
LB: loop body
LE: loop exit
PB: predicated region body
PF: predicated region fallthrough
CT: control target
= control target key end

     0   :  { %12 = vsyncpa [#allocation3], 0  ;;  %s1619_s0 = inlined_call_operand.hbm [shape: f32[8,2304], index: 0, kind: input, shape index: {}]   ;;  %s1620_s1 = inlined_call_operand.hbm [shape: f32[8,2304], index: 1, kind: input, shape index: {}]   ;;  %s1621_s2 = inlined_call_operand.hbm [shape: f32[1,2304], index: 2, kind: input, shape index: {}]   ;;  %s1622_s3 = inlined_call_operand.hbm [shape: f32[3,8,24], index: 3, kind: input, shape index: {}]   ;;  %s1623_s4 = inlined_call_operand.hbm [shape: f32[8,2304], index: 4, kind: output, shape index: {0}]   ;;  %s1624_s5 = inlined_call_operand.vmem [shape: f32[1,8,1], index: 5, kind: output, shape index: {1}]   ;;  %s1625_s6 = inlined_call_operand.vmem [shape: f32[1,8,1], index: 6, kind: output, shape index: {2}]  }
   0x1   :  { %13 = vsyncpa [#allocation6], 0 }
   0x2   :  { %14 = vsyncpa [#allocation9], 0  ;;  %s1022_s23 = scalar_lea.hbm %s1620_s1, 1536 }
   0x3   :  { %15 = vsyncpa [#allocation4], 0  ;;  %s1303_s24 = smov [#allocation5]   ;;  %s1360_s28 = scalar_lea.hbm %s1619_s0, 768 }
   0x4   :  { %s40_s25 = sshll.u32 %s1303_s24, 4  ;;  %s1197_s7 = scalar_lea.hbm %s1620_s1, 2304  ;;  %s41_s25 = int_to_ptr.vmem [resolvable:$true] %s40_s25 }
   0x5   :  { %p1174_p0 = scmp.ne.s32.totalorder %s1022_s23, %s1197_s7  ;;  %p1176_p1 = scmp.lt.u32.totalorder %s1022_s23, %s1620_s1 }
   0x6   :  { %p1177_p2 = scmp.lt.u32.totalorder %s1197_s7, %s1197_s7  ;;  %p1179_p4 = scmp.lt.u32.totalorder %s1197_s7, %s1022_s23 }
   0x8   :  { %p1178_p3 = por %p1177_p2, %p1176_p1 }
   0xa   :  { %p1180_p5 = por %p1179_p4, %p1178_p3 }
   0xc   :  { %p1181_p6 = pnand %p1180_p5, %p1174_p0 }
   0xe   :  { %1184 = shalt.err (!%p1181_p6)
}
   0xf   :  { %s1185_s10 = scalar_lea.vmem %s41_s25, 768  ;;  %p1190_p8 = scmp.lt.s32.totalorder %s41_s25, %s41_s25 }
  0x10   :  { %p1186_p7 = scmp.ne.s32.totalorder %s41_s25, %s1185_s10  ;;  %p1191_p9 = scmp.lt.s32.totalorder %s1185_s10, %s1185_s10 }
  0x12   :  { %p1192_p10 = por %p1191_p9, %p1190_p8 }
  0x14   :  { %p1193_p11 = pnand %p1192_p10, %p1186_p7 }
  0x16   :  { %1196 = shalt.err (!%p1193_p11)
}
  0x17   :  { %43 = dma.hbm_to_vmem [thread:$0]  %s1022_s23, 768, %s41_s25, [#allocation6]  }
  0x18   :  { %s1304_s11 = smov [#allocation2]   ;;  %s1371_s14 = scalar_lea.hbm %s1621_s2, 96 }
  0x19   :  { %s26_s12 = sshll.u32 %s1304_s11, 4  ;;  %s1222_s17 = scalar_lea.hbm %s1619_s0, 1536  ;;  %s27_s12 = int_to_ptr.vmem [resolvable:$true] %s26_s12 }
  0x1a   :  { %p1199_p12 = scmp.ne.s32.totalorder %s1360_s28, %s1222_s17  ;;  %s1200_s20 = scalar_lea.hbm %s1619_s0, 2304 }
  0x1b   :  { %p1201_p13 = scmp.lt.u32.totalorder %s1360_s28, %s1619_s0  ;;  %p1202_p0 = scmp.lt.u32.totalorder %s1200_s20, %s1222_s17 }
  0x1c   :  { %p1204_p2 = scmp.lt.u32.totalorder %s1222_s17, %s1360_s28 }
  0x1d   :  { %p1203_p1 = por %p1202_p0, %p1201_p13 }
  0x1f   :  { %p1205_p3 = por %p1204_p2, %p1203_p1 }
  0x21   :  { %p1206_p4 = pnand %p1205_p3, %p1199_p12 }
  0x23   :  { %1209 = shalt.err (!%p1206_p4)
}
  0x24   :  { %s1210_s23 = scalar_lea.vmem %s27_s12, 768  ;;  %p1215_p6 = scmp.lt.s32.totalorder %s27_s12, %s27_s12 }
  0x25   :  { %p1211_p5 = scmp.ne.s32.totalorder %s27_s12, %s1210_s23  ;;  %p1216_p7 = scmp.lt.s32.totalorder %s1210_s23, %s1210_s23 }
  0x27   :  { %p1217_p8 = por %p1216_p7, %p1215_p6 }
  0x29   :  { %p1218_p9 = pnand %p1217_p8, %p1211_p5 }
  0x2b   :  { %1221 = shalt.err (!%p1218_p9)
}
  0x2c   :  { %29 = dma.hbm_to_vmem [thread:$0]  %s1360_s28, 768, %s27_s12, [#allocation3]  }
  0x2d   :  { %s1305_s24 = smov [#allocation7]   ;;  %s1306_s25 = smov [#allocation8]  }
  0x2e   :  { %s54_s0 = sshll.u32 %s1305_s24, 4  ;;  %s63_s26 = sshll.u32 %s1306_s25, 4  ;;  %s55_s0 = int_to_ptr.vmem [resolvable:$true] %s54_s0  ;;  %s64_s26 = int_to_ptr.vmem [resolvable:$true] %s63_s26 }
  0x2f   :  { %s1247_s30 = scalar_lea.hbm %s1621_s2, 192  ;;  %s1225_s9 = scalar_lea.hbm %s1621_s2, 288 }
  0x30   :  { %p1224_p10 = scmp.ne.s32.totalorder %s1371_s14, %s1247_s30  ;;  %p1226_p11 = scmp.lt.u32.totalorder %s1371_s14, %s1621_s2 }
  0x31   :  { %p1227_p12 = scmp.lt.u32.totalorder %s1225_s9, %s1247_s30  ;;  %p1229_p0 = scmp.lt.u32.totalorder %s1247_s30, %s1371_s14 }
  0x33   :  { %p1228_p13 = por %p1227_p12, %p1226_p11 }
  0x35   :  { %p1230_p1 = por %p1229_p0, %p1228_p13 }
  0x37   :  { %p1231_p2 = pnand %p1230_p1, %p1224_p10 }
  0x39   :  { %1234 = shalt.err (!%p1231_p2)
}
  0x3a   :  { %s1235_s28 = scalar_lea.vmem %s55_s0, 96  ;;  %p1240_p4 = scmp.lt.s32.totalorder %s55_s0, %s55_s0 }
  0x3b   :  { %p1236_p3 = scmp.ne.s32.totalorder %s55_s0, %s1235_s28  ;;  %p1241_p5 = scmp.lt.s32.totalorder %s1235_s28, %s1235_s28 }
  0x3d   :  { %p1242_p6 = por %p1241_p5, %p1240_p4 }
  0x3f   :  { %p1243_p7 = pnand %p1242_p6, %p1236_p3 }
  0x41   :  { %1246 = shalt.err (!%p1243_p7)
}
  0x42   :  { %57 = dma.hbm_to_vmem [thread:$0]  %s1371_s14, 96, %s55_s0, [#allocation6]  }
  0x43   :  { %s1248_s2 = scalar_lea.hbm %s1622_s3, 384 }
  0x44   :  { %p1249_p8 = scmp.ne.s32.totalorder %s1622_s3, %s1248_s2  ;;  %p1252_p9 = scmp.lt.u32.totalorder %s1248_s2, %s1622_s3 }
  0x46   :  { %p1254_p10 = pnand %p1252_p9, %p1249_p8 }
  0x48   :  { %1257 = shalt.err (!%p1254_p10)
}
  0x49   :  { %s1258_s18 = scalar_lea.vmem %s64_s26, 384  ;;  %p1263_p12 = scmp.lt.s32.totalorder %s64_s26, %s64_s26 }
  0x4a   :  { %p1259_p11 = scmp.ne.s32.totalorder %s64_s26, %s1258_s18  ;;  %p1264_p13 = scmp.lt.s32.totalorder %s1258_s18, %s1258_s18 }
  0x4c   :  { %p1265_p0 = por %p1264_p13, %p1263_p12 }
  0x4e   :  { %p1266_p1 = pnand %p1265_p0, %p1259_p11 }
  0x50   :  { %1269 = shalt.err (!%p1266_p1)
}
  0x51   :  { %s1307_s14 = smov 128   ;;  %s1308_s19 = smov 8  }
  0x52   :  { %69 = dma.hbm_to_vmem [thread:$0]  %s1622_s3, 384, %s64_s26, [#allocation9], %s1307_s14, %s1307_s14, %s1308_s19  }
  0x53   :  { %1295 = dma.done.wait [#allocation3], 768  }
  0x54   :  { %1296 = vsyncadd [#allocation3], 4294966528 }
  0x55   :  { %1297 = dma.done.wait [#allocation6], 864  }
  0x56   :  { %1298 = vsyncadd [#allocation6], 4294966432 }
  0x57   :  { %1299 = dma.done.wait [#allocation9], 384  }
  0x58   :  { %1300 = vsyncadd [#allocation9], 4294966912  ;;  %v1411_v0 = vld [vmem:[#allocation2 + $0x28] sm:$0xff]  ;;  %v1413_v1 = vld [vmem:[#allocation5] sm:$0xff]  ;;  %s1309_s3 = smov 110   ;;  %s1310_s22 = smov 109   ;;  %v114_v15 = vlaneseq }
  0x59   :  { %v1415_v2 = vld [vmem:[#allocation2 + $0x8] sm:$0xff]  ;;  %v1098_v3 = vpack.i.bf16 %v1413_v1, %v1411_v0  ;;  %v1419_v4 = vld [vmem:[#allocation2 + $0x10] sm:$0xff]  ;;  %v1421_v5 = vld [vmem:[#allocation2] sm:$0xff]  ;;  %s1311_s23 = smov 127   ;;  %s1312_s24 = smov 108   ;;  %v1313_v11 = vmov 0.0  }
  0x5a   :  { %v1423_v6 = vld [vmem:[#allocation2 + $0x20] sm:$0xff]  ;;  %v1108_v7 = vpack.i.bf16 %v1419_v4, %v1415_v2  ;;  %v1133_v9 = vpack.i.bf16 %v1411_v0, %v1421_v5  ;;  %v1433_v10 = vld [vmem:[#allocation2 + $0x18] sm:$0xff]  ;;  %275 = vmatprep.mubr.f32.mxu1 %v1313_v11  ;;  %417 = vmatprep.mubr.f32.mxu0 %v1313_v11  ;;  %s1314_s0 = smov 126   ;;  %s1315_s25 = smov 92   ;;  %v1468_v17 = vand.u32 127, %v114_v15  ;;  %vm207_vm4 = vcmask 195584  }
  0x5b   :  { %1099 = vrot.lane.b32.xlu0 %v1098_v3, %s1309_s3  ;;  %v1113_v8 = vpack.i.bf16 %v1421_v5, %v1423_v6  ;;  %v1138_v12 = vpack.i.bf16 %v1423_v6, %v1413_v1  ;;  %s1316_s26 = smov 91   ;;  %v1153_v13 = vpack.i.bf16 %v1433_v10, %v1421_v5  ;;  %v1163_v14 = vpack.i.bf16 %v1411_v0, %v1423_v6  ;;  %s1317_s27 = smov 90  }
  0x5c   :  { %1109 = vrot.lane.b32.xlu1 %v1108_v7, %s1309_s3  ;;  %vm158_vm0 = vcmp.lt.s32.totalorder %v1468_v17, 110  ;;  %vm179_vm1 = vcmp.lt.s32.totalorder %v1468_v17, 109  ;;  %vm200_vm2 = vcmp.lt.s32.totalorder %v1468_v17, 108  ;;  %vm116_vm3 = vcmp.lt.s32.totalorder %v1468_v17, 127  ;;  %s1024_s7 = scalar_lea.hbm %s1623_s4, 768  ;;  %s1318_s8 = smov [#allocation10]  }
  0x5d   :  { %vm137_vm5 = vcmp.lt.s32.totalorder %v1468_v17, 126  ;;  %vm654_vm6 = vcmp.lt.s32.totalorder %v1468_v17, 92  ;;  %vm675_vm7 = vcmp.lt.s32.totalorder %v1468_v17, 91  ;;  %vm696_vm8 = vcmp.lt.s32.totalorder %v1468_v17, 90  ;;  %s1002_s9 = sshll.u32 %s1318_s8, 4  ;;  %s1003_s9 = int_to_ptr.vmem [resolvable:$true] %s1002_s9 }
  0x5e   :  { %s1270_s10 = scalar_lea.vmem %s1003_s9, 768  ;;  %p1275_p3 = scmp.lt.s32.totalorder %s1003_s9, %s1003_s9 }
  0x5f   :  { %1104 = vrot.lane.b32.xlu0 %v1098_v3, %s1310_s22  ;;  %p1271_p2 = scmp.ne.s32.totalorder %s1003_s9, %s1270_s10  ;;  %p1276_p4 = scmp.lt.s32.totalorder %s1270_s10, %s1270_s10 }
  0x60   :  { %1114 = vrot.lane.b32.xlu1 %v1113_v8, %s1309_s3 }
  0x61   :  { %p1277_p5 = por %p1276_p4, %p1275_p3 }
  0x63   :  { %1119 = vrot.lane.b32.xlu0 %v1108_v7, %s1310_s22  ;;  %p1278_p6 = pnand %p1277_p5, %p1271_p2 }
  0x64   :  { %1124 = vrot.lane.b32.xlu1 %v1113_v8, %s1310_s22 }
  0x67   :  { %1129 = vrot.lane.b32.xlu0 %v1108_v7, %s1311_s23 }
  0x68   :  { %196 = vrot.lane.b32.xlu1 %v1411_v0, %s1312_s24 }
  0x6b   :  { %198 = vrot.lane.b32.xlu0 %v1413_v1, %s1312_s24 }
  0x6c   :  { %1134 = vrot.lane.b32.xlu1 %v1133_v9, %s1311_s23 }
  0x6f   :  { %150 = vrot.lane.b32.xlu0 %v1433_v10, %s1309_s3 }
  0x70   :  { %171 = vrot.lane.b32.xlu1 %v1433_v10, %s1310_s22 }
  0x73   :  { %188 = vrot.lane.b32.xlu0 %v1415_v2, %s1312_s24 }
  0x74   :  { %190 = vrot.lane.b32.xlu1 %v1419_v4, %s1312_s24 }
  0x77   :  { %194 = vrot.lane.b32.xlu0 %v1423_v6, %s1312_s24 }
  0x78   :  { %186 = vrot.lane.b32.xlu1 %v1421_v5, %s1312_s24 }
  0x7b   :  { %1139 = vrot.lane.b32.xlu0 %v1138_v12, %s1311_s23 }
  0x7c   :  { %125 = vrot.lane.b32.xlu1 %v1415_v2, %s1314_s0 }
  0x7f   :  { %127 = vrot.lane.b32.xlu0 %v1419_v4, %s1314_s0 }
  0x80   :  { %123 = vrot.lane.b32.xlu1 %v1421_v5, %s1314_s0 }
  0x83   :  { %192 = vrot.lane.b32.xlu0 %v1433_v10, %s1312_s24 }
  0x84   :  { %106 = vrot.lane.b32.xlu1 %v1433_v10, %s1311_s23 }
  0x87   :  { %133 = vrot.lane.b32.xlu0 %v1411_v0, %s1314_s0 }
  0x88   :  { %135 = vrot.lane.b32.xlu1 %v1413_v1, %s1314_s0 }
  0x8b   :  { %1144 = vrot.lane.b32.xlu0 %v1108_v7, %s1315_s25 }
  0x8c   :  { %1149 = vrot.lane.b32.xlu1 %v1108_v7, %s1316_s26 }
  0x8f   :  { %131 = vrot.lane.b32.xlu0 %v1423_v6, %s1314_s0 }
  0x90   :  { %1154 = vrot.lane.b32.xlu1 %v1153_v13, %s1315_s25 }
  0x93   :  { %1159 = vrot.lane.b32.xlu0 %v1153_v13, %s1316_s26  ;;  %v98_v13 = vld [vmem:[#allocation8 + $0x8] sm:$0xff] }
  0x94   :  { %129 = vrot.lane.b32.xlu1 %v1433_v10, %s1314_s0 }
  0x97   :  { %1164 = vrot.lane.b32.xlu0 %v1163_v14, %s1315_s25 }
  0x98   :  { %1169 = vrot.lane.b32.xlu1 %v1163_v14, %s1316_s26 }
  0x9b   :  { %684 = vrot.lane.b32.xlu0 %v1415_v2, %s1317_s27 }
  0x9c   :  { %686 = vrot.lane.b32.xlu1 %v1419_v4, %s1317_s27 }
  0x9f   :  { %682 = vrot.lane.b32.xlu0 %v1421_v5, %s1317_s27 }
  0xa0   :  { %652 = vrot.lane.b32.xlu1 %v1413_v1, %s1315_s25 }
  0xa3   :  { %673 = vrot.lane.b32.xlu0 %v1413_v1, %s1316_s26 }
  0xa4   :  { %688 = vrot.lane.b32.xlu1 %v1433_v10, %s1317_s27 }
  0xa7   :  { %690 = vrot.lane.b32.xlu0 %v1423_v6, %s1317_s27 }
  0xa8   :  { %692 = vrot.lane.b32.xlu1 %v1411_v0, %s1317_s27 }
  0xab   :  { %694 = vrot.lane.b32.xlu0 %v1413_v1, %s1317_s27 }
  0xcd   :  { %v1100_v16 = vpop.permute.xlu0 %1099 }
  0xce   :  { %v1110_v18 = vpop.permute.xlu1 %1109  ;;  %v1102_v19 = vunpack.i.h.bf16 %v1100_v16  ;;  %v1101_v20 = vunpack.i.l.bf16 %v1100_v16 }
  0xcf   :  { %v1112_v25 = vunpack.i.h.bf16 %v1110_v18  ;;  %v1111_v26 = vunpack.i.l.bf16 %v1110_v18 }
  0xd0   :  { %v159_v28 = vsel %vm158_vm0, %v1101_v20, %v1102_v19 }
  0xd1   :  { %v1105_v21 = vpop.permute.xlu0 %1104  ;;  %v163_v38 = vsel %vm158_vm0, %v1111_v26, %v1112_v25 }
  0xd2   :  { %v1107_v22 = vunpack.i.h.bf16 %v1105_v21  ;;  %v1106_v23 = vunpack.i.l.bf16 %v1105_v21  ;;  %v1115_v24 = vpop.permute.xlu1 %1114 }
  0xd3   :  { %v1116_v27 = vunpack.i.l.bf16 %v1115_v24  ;;  %v1117_v30 = vunpack.i.h.bf16 %v1115_v24 }
  0xd4   :  { %v180_v29 = vsel %vm179_vm1, %v1106_v23, %v1107_v22 }
  0xd5   :  { %v1120_v31 = vpop.permute.xlu0 %1119  ;;  %v1042_v32 = vpack.c.bf16 %v180_v29, %v159_v28  ;;  %v160_v40 = vsel %vm158_vm0, %v1116_v27, %v1101_v20  ;;  %v164_v44 = vsel %vm158_vm0, %v1117_v30, %v1111_v26  ;;  %v97_v28 = vld [vmem:[#allocation8] sm:$0xff] }
  0xd6   :  { %v1122_v33 = vunpack.i.h.bf16 %v1120_v31  ;;  %v1121_v34 = vunpack.i.l.bf16 %v1120_v31  ;;  %v1125_v35 = vpop.permute.xlu1 %1124 }
  0xd7   :  { %v1127_v36 = vunpack.i.h.bf16 %v1125_v35  ;;  %v1126_v37 = vunpack.i.l.bf16 %v1125_v35  ;;  %1043 = vmatprep.subr.bf16.mxu0 %v1042_v32 }
  0xd8   :  { %v184_v39 = vsel %vm179_vm1, %v1121_v34, %v1122_v33 }
  0xd9   :  { %v1482_v41 = vpop.permute.xlu0 %1129  ;;  %v1034_v42 = vpack.c.bf16 %v184_v39, %v163_v38  ;;  %v181_v43 = vsel %vm179_vm1, %v1126_v37, %v1106_v23  ;;  %v185_v45 = vsel %vm179_vm1, %v1127_v36, %v1121_v34 }
  0xda   :  { %v197_v46 = vpop.permute.xlu1 %196  ;;  %v1044_v47 = vpack.c.bf16 %v181_v43, %v160_v40  ;;  %v1036_v48 = vpack.c.bf16 %v185_v45, %v164_v44  ;;  %v1132_v54 = vunpack.i.h.bf16 %v1482_v41  ;;  %v1131_v55 = vunpack.i.l.bf16 %v1482_v41 }
  0xdb   :  { %1035 = vmatprep.subr.bf16.mxu1 %v1034_v42 }
  0xdc   :  { %1045 = vmatpush1.bf16.msra.mxu0 %v1044_v47  ;;  %1037 = vmatpush1.bf16.msra.mxu1 %v1036_v48  ;;  %v121_v60 = vsel %vm116_vm3, %v1131_v55, %v1132_v54 }
  0xdd   :  { %v199_v49 = vpop.permute.xlu0 %198  ;;  %v1046_v12 = vpack.c.bf16 %v121_v60, %v1415_v2 }
  0xde   :  { %v1135_v50 = vpop.permute.xlu1 %1134  ;;  %v201_v51 = vsel %vm200_vm2, %v197_v46, %v199_v49 }
  0xdf   :  { %357 = vmatprep.subr.mxu0 %v201_v51  ;;  %v1136_v57 = vunpack.i.l.bf16 %v1135_v50  ;;  %v1137_v21 = vunpack.i.h.bf16 %v1135_v50 }
  0xe1   :  { %v151_v52 = vpop.permute.xlu0 %150  ;;  %v122_v7 = vsel %vm116_vm3, %v1136_v57, %v1131_v55 }
  0xe2   :  { %v172_v53 = vpop.permute.xlu1 %171  ;;  %v161_v61 = vsel %vm158_vm0, %v151_v52, %v1116_v27  ;;  %v162_v63 = vsel %vm158_vm0, %v1112_v25, %v151_v52  ;;  %v1048_v19 = vpack.c.bf16 %v122_v7, %v1421_v5 }
  0xe3   :  { %v182_v62 = vsel %vm179_vm1, %v172_v53, %v1126_v37  ;;  %v183_v1 = vsel %vm179_vm1, %v1122_v33, %v172_v53 }
  0xe4   :  { %v1038_v14 = vpack.c.bf16 %v182_v62, %v161_v61  ;;  %v1040_v18 = vpack.c.bf16 %v183_v1, %v162_v63 }
  0xe5   :  { %v189_v56 = vpop.permute.xlu0 %188 }
  0xe6   :  { %v191_v58 = vpop.permute.xlu1 %190 }
  0xe7   :  { %v205_v59 = vsel %vm200_vm2, %v189_v56, %v191_v58 }
  0xe8   :  { %215 = vmatprep.subr.mxu1 %v205_v59 }
  0xe9   :  { %v195_v3 = vpop.permute.xlu0 %194 }
  0xea   :  { %v187_v8 = vpop.permute.xlu1 %186  ;;  %v202_v9 = vsel %vm200_vm2, %v195_v3, %v197_v46 }
  0xeb   :  { %v206_v16 = vsel %vm200_vm2, %v187_v8, %v189_v56  ;;  %358 = vmatpush1.msra.mxu0 %v202_v9 }
  0xec   :  { %216 = vmatpush1.msra.mxu1 %v206_v16  ;;  %1047 = vmatprep.subr.bf16.mxu0 %v1046_v12 }
  0xed   :  { %1039 = vmatprep.subr.bf16.mxu1 %v1038_v14  ;;  %v1140_v20 = vpop.permute.xlu0 %1139  ;;  %1025 = vmatmul.mubr.msk.f32.vlgmr.msra.gmra.mrb[0].mxu1 %vm207_vm4, %v98_v13 }
  0xee   :  { %v1142_v22 = vunpack.i.h.bf16 %v1140_v20  ;;  %v1141_v23 = vunpack.i.l.bf16 %v1140_v20  ;;  %v126_v2 = vpop.permute.xlu1 %125  ;;  %1041 = vmatpush1.bf16.msra.mxu1 %v1040_v18  ;;  %1027 = vmatmul.mubr.msk.f32.vlgmr.msra.gmra.mrb[0].mxu0 %vm207_vm4, %v98_v13 }
  0xef   :  { %1049 = vmatpush1.bf16.msra.mxu0 %v1048_v19  ;;  %491 = vmatprep.mubr.f32.mxu0 %v1313_v11 }
  0xf0   :  { %v117_v24 = vsel %vm116_vm3, %v1137_v21, %v1141_v23  ;;  %346 = vmatprep.mubr.f32.mxu1 %v1313_v11  ;;  %v118_v5 = vsel %vm116_vm3, %v1142_v22, %v1137_v21  ;;  %v99_v23 = vld [vmem:[#allocation8 + $0x10] sm:$0xff] }
  0xf1   :  { %v128_v25 = vpop.permute.xlu0 %127  ;;  %v1054_v30 = vpack.c.bf16 %v117_v24, %v1411_v0  ;;  %v1056_v31 = vpack.c.bf16 %v118_v5, %v1423_v6 }
  0xf2   :  { %v124_v26 = vpop.permute.xlu1 %123  ;;  %v142_v27 = vsel %vm137_vm5, %v126_v2, %v128_v25 }
  0xf3   :  { %v143_v29 = vsel %vm137_vm5, %v124_v26, %v126_v2  ;;  %431 = vmatprep.subr.mxu0 %v142_v27 }
  0xf4   :  { %432 = vmatpush1.msra.mxu0 %v143_v29 }
  0xf5   :  { %v193_v32 = vpop.permute.xlu0 %192  ;;  %1055 = vmatprep.subr.bf16.mxu0 %v1054_v30  ;;  %1028 = vmatmul.mubr.msk.f32.vlgmr.msra.gmra.mrb[2].mxu0 %vm207_vm4, %v97_v28 }
  0xf6   :  { %v204_v33 = vsel %vm200_vm2, %v191_v58, %v193_v32  ;;  %v107_v34 = vpop.permute.xlu1 %106  ;;  %1057 = vmatpush1.bf16.msra.mxu0 %v1056_v31  ;;  %v203_v35 = vsel %vm200_vm2, %v193_v32, %v195_v3  ;;  %633 = vmatprep.mubr.f32.mxu0 %v1313_v11 }
  0xf7   :  { %v119_v0 = vsel %vm116_vm3, %v107_v34, %v1142_v22  ;;  %v120_v6 = vsel %vm116_vm3, %v1132_v54, %v107_v34  ;;  %286 = vmatprep.subr.mxu1 %v203_v35 }
  0xf8   :  { %v1050_v36 = vpack.c.bf16 %v119_v0, %v1433_v10  ;;  %v1052_v37 = vpack.c.bf16 %v120_v6, %v1419_v4  ;;  %287 = vmatpush1.msra.mxu1 %v204_v33 }
  0xf9   :  { %v134_v38 = vpop.permute.xlu0 %133  ;;  %1026 = vmatmul.mubr.msk.f32.vlgmr.msra.gmra.mrb[2].mxu1 %vm207_vm4, %v98_v13 }
  0xfa   :  { %v136_v39 = vpop.permute.xlu1 %135  ;;  %1051 = vmatprep.subr.bf16.mxu1 %v1050_v36  ;;  %562 = vmatprep.mubr.f32.mxu1 %v1313_v11 }
  0xfb   :  { %1053 = vmatpush1.bf16.msra.mxu1 %v1052_v37  ;;  %v138_v40 = vsel %vm137_vm5, %v134_v38, %v136_v39 }
  0xfc   :  { %573 = vmatprep.subr.mxu0 %v138_v40  ;;  %v931_v40 = vld [vmem:[#allocation7] sm:$0x3f] }
  0xfd   :  { %v1145_v41 = vpop.permute.xlu0 %1144 }
  0xfe   :  { %v1147_v42 = vunpack.i.h.bf16 %v1145_v41  ;;  %v1146_v10 = vunpack.i.l.bf16 %v1145_v41  ;;  %v1150_v43 = vpop.permute.xlu1 %1149 }
  0xff   :  { %v1152_v4 = vunpack.i.h.bf16 %v1150_v43  ;;  %v1151_v44 = vunpack.i.l.bf16 %v1150_v43 }
 0x100   :  { %v659_v45 = vsel %vm654_vm6, %v1146_v10, %v1147_v42 }
 0x101   :  { %v132_v46 = vpop.permute.xlu0 %131  ;;  %v680_v47 = vsel %vm675_vm7, %v1151_v44, %v1152_v4 }
 0x102   :  { %v139_v48 = vsel %vm137_vm5, %v132_v46, %v134_v38  ;;  %v1155_v49 = vpop.permute.xlu1 %1154  ;;  %v1058_v50 = vpack.c.bf16 %v680_v47, %v659_v45  ;;  %v934_v38 = vshrl.u32 %v114_v15, 7 }
 0x103   :  { %574 = vmatpush1.msra.mxu0 %v139_v48  ;;  %v1156_v51 = vunpack.i.l.bf16 %v1155_v49  ;;  %v1157_v62 = vunpack.i.h.bf16 %v1155_v49 }
 0x104   :  { %1059 = vmatprep.subr.bf16.mxu0 %v1058_v50  ;;  %1030 = vmatmul.mubr.msk.f32.vlgmr.msra.gmra.mrb[0].mxu0 %vm207_vm4, %v97_v28  ;;  %v935_v39 = vsub.s32 0, %v934_v38  ;;  %v939_v41 = vsub.s32 1, %v934_v38  ;;  %v947_v47 = vsub.s32 3, %v934_v38  ;;  %v951_v15 = vsub.s32 4, %v934_v38 }
 0x105   :  { %v1160_v52 = vpop.permute.xlu0 %1159  ;;  %770 = vmatprep.mubr.f32.mxu0 %v1313_v11  ;;  %v660_v57 = vsel %vm654_vm6, %v1156_v51, %v1146_v10  ;;  %v658_v13 = vsel %vm654_vm6, %v1147_v42, %v1157_v62 }
 0x106   :  { %v1161_v53 = vunpack.i.l.bf16 %v1160_v52  ;;  %v130_v54 = vpop.permute.xlu1 %129  ;;  %v1162_v58 = vunpack.i.h.bf16 %v1160_v52  ;;  %v936_v42 = vrot.slane %v931_v40, %v935_v39  ;;  %v940_v43 = vrot.slane %v931_v40, %v939_v41 }
 0x107   :  { %v141_v55 = vsel %vm137_vm5, %v128_v25, %v130_v54  ;;  %v140_v56 = vsel %vm137_vm5, %v130_v54, %v132_v46  ;;  %v943_v46 = vsub.s32 2, %v934_v38  ;;  %v955_v54 = vsub.s32 5, %v934_v38 }
 0x108   :  { %v681_v59 = vsel %vm675_vm7, %v1161_v53, %v1151_v44  ;;  %502 = vmatprep.subr.mxu1 %v140_v56  ;;  %v679_v7 = vsel %vm675_vm7, %v1152_v4, %v1162_v58  ;;  %v948_v53 = vrot.slane %v931_v40, %v947_v47 }
 0x109   :  { %v1060_v60 = vpack.c.bf16 %v681_v59, %v660_v57  ;;  %503 = vmatpush1.msra.mxu1 %v141_v55  ;;  %v1165_v61 = vpop.permute.xlu0 %1164  ;;  %v1064_v18 = vpack.c.bf16 %v679_v7, %v658_v13  ;;  %v944_v52 = vrot.slane %v931_v40, %v943_v46  ;;  %v952_v59 = vrot.slane %v931_v40, %v951_v15 }
 0x10a   :  { %v1166_v63 = vunpack.i.l.bf16 %v1165_v61  ;;  %v1170_v1 = vpop.permute.xlu1 %1169  ;;  %1029 = vmatmul.mubr.msk.f32.vlgmr.msra.gmra.mrb[2].mxu1 %vm207_vm4, %v97_v28  ;;  %v1167_v20 = vunpack.i.h.bf16 %v1165_v61  ;;  %v956_v61 = vrot.slane %v931_v40, %v955_v54 }
 0x10b   :  { %v1171_v3 = vunpack.i.l.bf16 %v1170_v1  ;;  %1061 = vmatpush1.bf16.msra.mxu0 %v1060_v60  ;;  %841 = vmatprep.mubr.f32.mxu1 %v1313_v11  ;;  %v1172_v21 = vunpack.i.h.bf16 %v1170_v1 }
 0x10c   :  { %v657_v8 = vsel %vm654_vm6, %v1157_v62, %v1166_v63  ;;  %v656_v5 = vsel %vm654_vm6, %v1166_v63, %v1167_v20 }
 0x10d   :  { %v685_v9 = vpop.permute.xlu0 %684  ;;  %v678_v12 = vsel %vm675_vm7, %v1162_v58, %v1171_v3  ;;  %v677_v25 = vsel %vm675_vm7, %v1171_v3, %v1172_v21 }
 0x10e   :  { %v687_v14 = vpop.permute.xlu1 %686  ;;  %v1062_v16 = vpack.c.bf16 %v678_v12, %v657_v8  ;;  %v1068_v31 = vpack.c.bf16 %v677_v25, %v656_v5 }
 0x10f   :  { %v701_v19 = vsel %vm696_vm8, %v685_v9, %v687_v14 }
 0x110   :  { %710 = vmatprep.subr.mxu0 %v701_v19  ;;  %1063 = vmatprep.subr.bf16.mxu1 %v1062_v16 }
 0x111   :  { %1065 = vmatpush1.bf16.msra.mxu1 %v1064_v18  ;;  %v683_v22 = vpop.permute.xlu0 %682 }
 0x112   :  { %v702_v2 = vsel %vm696_vm8, %v683_v22, %v685_v9  ;;  %v653_v24 = vpop.permute.xlu1 %652 }
 0x113   :  { %711 = vmatpush1.msra.mxu0 %v702_v2  ;;  %v655_v27 = vsel %vm654_vm6, %v1167_v20, %v653_v24 }
 0x114   :  { %1031 = vmatmul.mubr.msk.f32.vlgmr.msra.gmra.mrb[2].mxu0 %vm207_vm4, %v99_v23 }
 0x115   :  { %v674_v26 = vpop.permute.xlu0 %673  ;;  %912 = vmatprep.mubr.f32.mxu0 %v1313_v11 }
 0x116   :  { %v676_v28 = vsel %vm675_vm7, %v1172_v21, %v674_v26  ;;  %v689_v29 = vpop.permute.xlu1 %688 }
 0x117   :  { %v1066_v30 = vpack.c.bf16 %v676_v28, %v655_v27  ;;  %v700_v34 = vsel %vm696_vm8, %v687_v14, %v689_v29 }
 0x119   :  { %v691_v32 = vpop.permute.xlu0 %690  ;;  %1067 = vmatprep.subr.bf16.mxu0 %v1066_v30 }
 0x11a   :  { %1069 = vmatpush1.bf16.msra.mxu0 %v1068_v31  ;;  %v699_v33 = vsel %vm696_vm8, %v689_v29, %v691_v32  ;;  %v693_v11 = vpop.permute.xlu1 %692 }
 0x11b   :  { %781 = vmatprep.subr.mxu1 %v699_v33  ;;  %v698_v6 = vsel %vm696_vm8, %v691_v32, %v693_v11 }
 0x11c   :  { %782 = vmatpush1.msra.mxu1 %v700_v34 }
 0x11d   :  { %v695_v35 = vpop.permute.xlu0 %694  ;;  %1032 = vmatmul.mubr.msk.f32.vlgmr.msra.gmra.mrb[2].mxu1 %vm207_vm4, %v99_v23 }
 0x11e   :  { %v697_v0 = vsel %vm696_vm8, %v693_v11, %v695_v35 }
 0x11f   :  { %852 = vmatprep.subr.mxu0 %v697_v0 }
 0x120   :  { %853 = vmatpush1.msra.mxu0 %v698_v6 }
 0x121   :  { %1033 = vmatmul.mubr.msk.f32.vlgmr.msra.gmra.mrb[0].mxu0 %vm207_vm4, %v99_v23 }
 0x1c0   :  { %v277_v36 = vpop.f32.mrb[0].mxu1 }
 0x1c1   :  { %v279_v37 = vpop.f32.mrb[1].mxu1 }
 0x1e7   :  { %v772_v10 = vpop.f32.mrb[2].mxu0 }
 0x1e8   :  { %v1070_v4 = vadd.f32 %v772_v10, %v277_v36  ;;  %v774_v44 = vpop.f32.mrb[3].mxu0 }
 0x1e9   :  { %v1071_v45 = vadd.f32 %v774_v44, %v279_v37 }
 0x1ea   :  { %925 = vst [vmem:[#allocation10] sm:$0xff] %v1070_v4  ;;  %v963_v17 = vmul.f32 %v1070_v4, %v936_v42 }
 0x1eb   :  { %926 = vst [vmem:[#allocation10 + $0x8] sm:$0xff] %v1071_v45  ;;  %v964_v48 = vmul.f32 %v1071_v45, %v940_v43 }
 0x1ec   :  { %v978_v49 = vmul.f32 %v1070_v4, %v963_v17 }
 0x1ed   :  { %v969_v50 = vadd.f32 %v964_v48, %v963_v17  ;;  %v979_v51 = vmul.f32 %v1071_v45, %v964_v48 }
 0x1ef   :  { %v984_v55 = vadd.f32 %v979_v51, %v978_v49 }
 0x1f0   :  { %v843_v56 = vpop.f32.mrb[2].mxu1 }
 0x1f1   :  { %927 = vst [vmem:[#allocation10 + $0x10] sm:$0xff] %v843_v56  ;;  %v965_v57 = vmul.f32 %v944_v52, %v843_v56  ;;  %v845_v58 = vpop.f32.mrb[3].mxu1 }
 0x1f2   :  { %928 = vst [vmem:[#allocation10 + $0x18] sm:$0xff] %v845_v58  ;;  %v966_v60 = vmul.f32 %v948_v53, %v845_v58 }
 0x1f3   :  { %v970_v62 = vadd.f32 %v969_v50, %v965_v57  ;;  %v980_v63 = vmul.f32 %v965_v57, %v843_v56 }
 0x1f4   :  { %v981_v1 = vmul.f32 %v966_v60, %v845_v58  ;;  %v914_v3 = vpop.f32.mrb[0].mxu0 }
 0x1f5   :  { %v985_v7 = vadd.f32 %v984_v55, %v980_v63  ;;  %v971_v8 = vadd.f32 %v970_v62, %v966_v60  ;;  %929 = vst [vmem:[#allocation10 + $0x20] sm:$0xff] %v914_v3  ;;  %v967_v9 = vmul.f32 %v952_v59, %v914_v3  ;;  %v916_v12 = vpop.f32.mrb[1].mxu0 }
 0x1f6   :  { %930 = vst [vmem:[#allocation10 + $0x28] sm:$0xff] %v916_v12  ;;  %v968_v13 = vmul.f32 %v956_v61, %v916_v12 }
 0x1f7   :  { %v986_v14 = vadd.f32 %v985_v7, %v981_v1  ;;  %v982_v16 = vmul.f32 %v967_v9, %v914_v3  ;;  %v972_v18 = vadd.f32 %v971_v8, %v967_v9 }
 0x1f8   :  { %v983_v19 = vmul.f32 %v968_v13, %v916_v12 }
 0x1f9   :  { %v973_v20 = vadd.f32 %v972_v18, %v968_v13  ;;  %v987_v21 = vadd.f32 %v986_v14, %v982_v16 }
 0x1fb   :  { %974 = vadd.xlane.f32.xlu1 %v973_v20  ;;  %v988_v22 = vadd.f32 %v987_v21, %v983_v19 }
 0x1fd   :  { %989 = vadd.xlane.f32.xlu0 %v988_v22 }
 0x1fe   :  { %1281 = shalt.err (!%p1278_p6)
}
 0x1ff   :  { %s1294_s12 = scalar_lea.hbm %s1623_s4, 1536  ;;  %s1284_s13 = scalar_lea.hbm %s1623_s4, 2304 }
 0x200   :  { %p1283_p7 = scmp.ne.s32.totalorder %s1024_s7, %s1294_s12  ;;  %p1285_p8 = scmp.lt.u32.totalorder %s1024_s7, %s1623_s4 }
 0x201   :  { %p1286_p9 = scmp.lt.u32.totalorder %s1284_s13, %s1294_s12  ;;  %p1288_p11 = scmp.lt.u32.totalorder %s1294_s12, %s1024_s7 }
 0x203   :  { %p1287_p10 = por %p1286_p9, %p1285_p8 }
 0x205   :  { %p1289_p12 = por %p1288_p11, %p1287_p10 }
 0x207   :  { %p1290_p13 = pnand %p1289_p12, %p1283_p7 }
 0x209   :  { %1293 = shalt.err (!%p1290_p13)
}
 0x20a   :  { %1005 = dma.vmem_to_hbm [thread:$0]  %s1003_s9, 768, %s1024_s7, [#allocation4]   ;;  %vm976_vm9 = vcmask 7168  }
 0x288   :  { %v975_v23 = vpop.xlane.xlu1 %974 }
 0x289   :  { %977 = vst.msk [vmem:[%s1624_s5] sm:$0xff] %vm976_vm9, %v975_v23 }
 0x28a   :  { %v990_v2 = vpop.xlane.xlu0 %989 }
 0x28b   :  { %991 = vst.msk [vmem:[%s1625_s6] sm:$0xff] %vm976_vm9, %v990_v2 }
 0x28c   :  { %1301 = dma.done.wait [#allocation4], 768  }
 0x28d   :  { %1302 = vsyncadd [#allocation4], 4294966528 }
 0x28e   :  { %1017 = vsyncpa [#allocation3], 1 }
 0x28f   :  { %1018 = vsyncpa [#allocation6], 1 }
 0x290   :  { %1019 = vsyncpa [#allocation9], 1 }
 0x291   :  { %1020 = vsyncpa [#allocation4], 1 }

</bundles_post_ra>
